<compile_context>
chip_gen: v5e
topology: v5e:2x2
jax: 0.10.0
libtpu: 0.0.40
codegen_flags: <defaults>
</compile_context>

<pallas_src>
import jax
import jax.numpy as jnp
from jax.experimental import pallas as pl
from jax.experimental.pallas import tpu as pltpu

IN_DIM = 256
HID_DIM = 32
OUT_DIM = 2


def _round_up(v, m):
    return ((v + m - 1) // m) * m


def _default_tile_b():
    """2048 rows on v5e/v6e, 4096 on v7x (faster HBM needs bigger tiles to amortize)."""
    try:
        kind = jax.devices()[0].device_kind.lower()
    except Exception:  # pragma: no cover - e.g. interpret mode on CPU
        kind = ""
    return 4096 if "v7" in kind else 2048


def _mlp_kernel(x_ref, w1_ref, b1_ref, w2_ref, b2_ref, o_ref):
    # Linear(256,32) on the MXU with f32 accumulation, bias + ReLU on the VPU.
    h = jnp.dot(x_ref[...], w1_ref[...], preferred_element_type=jnp.float32)
    h = jnp.maximum(h + b1_ref[...], 0.0)            # (tile_b, 32) + (1, 32)
    # Linear(32,2).
    y = jnp.dot(h, w2_ref[...], preferred_element_type=jnp.float32)
    o_ref[...] = (y + b2_ref[...]).astype(o_ref.dtype)   # (tile_b, 2) + (1, 2)


def feature_discriminator(x, w1, b1, w2, b2, *, tile_b=None, use_bf16=False):
    """x: (B, 256) -> (B, 2).  w1: (256,32), b1: (1,32), w2: (32,2), b2: (1,2).

    Weights are stored (in_features, out_features), i.e. the transpose of
    PyTorch's nn.Linear weight, so the kernel computes x @ W + b directly.
    use_bf16=True halves HBM read traffic for x/W1 (f32 accumulation kept).
    """
    B = x.shape[0]
    if tile_b is None:
        tile_b = _default_tile_b()

    # Don't tile beyond the (sublane-rounded) batch; keep sublane (8) alignment.
    tile_b = min(tile_b, _round_up(max(B, 1), 8))
    # Keep >= 2 grid steps for large batches so a v7x megacore can split them.
    if B >= 1024 and pl.cdiv(B, tile_b) == 1:
        tile_b = _round_up(pl.cdiv(B, 2), 8)
    n_steps = pl.cdiv(B, tile_b)

    if use_bf16:
        x = x.astype(jnp.bfloat16)
        w1 = w1.astype(jnp.bfloat16)

    cost = pl.CostEstimate(
        flops=2 * B * IN_DIM * HID_DIM + 2 * B * HID_DIM * OUT_DIM,
        transcendentals=0,
        bytes_accessed=(x.dtype.itemsize * B * IN_DIM          # dominant: stream x
                        + 4 * B * OUT_DIM                       # output write
                        + w1.dtype.itemsize * IN_DIM * HID_DIM  # W1 (once)
                        + 4 * (HID_DIM + HID_DIM * OUT_DIM + OUT_DIM)),
    )

    out = pl.pallas_call(
        _mlp_kernel,
        out_shape=jax.ShapeDtypeStruct((B, OUT_DIM), jnp.float32),
        grid_spec=pltpu.PrefetchScalarGridSpec(
            num_scalar_prefetch=0,
            grid=(n_steps,),
            in_specs=[
                pl.BlockSpec((tile_b, IN_DIM), lambda i: (i, 0)),    # x tile (streamed)
                pl.BlockSpec((IN_DIM, HID_DIM), lambda i: (0, 0)),   # W1 (resident)
                pl.BlockSpec((1, HID_DIM), lambda i: (0, 0)),        # b1
                pl.BlockSpec((HID_DIM, OUT_DIM), lambda i: (0, 0)),  # W2
                pl.BlockSpec((1, OUT_DIM), lambda i: (0, 0)),        # b2
            ],
            out_specs=pl.BlockSpec((tile_b, OUT_DIM), lambda i: (i, 0)),
        ),
        compiler_params=pltpu.CompilerParams(
            # Batch-tile axis is embarrassingly parallel (lets v7x shard across TCs).
            dimension_semantics=("parallel",),
        ),
        cost_estimate=cost,
    )(x, w1, b1, w2, b2)
    return out


def _init_params(key):
    """Deterministic init mimicking nn.Linear's U(-1/sqrt(fan_in), 1/sqrt(fan_in))."""
    k1, k2, k3, k4 = jax.random.split(key, 4)
    bound1 = 1.0 / jnp.sqrt(IN_DIM)
    bound2 = 1.0 / jnp.sqrt(HID_DIM)
    # Stored as (in, out): equals transpose of PyTorch's (out, in) weight.
    w1 = jax.random.uniform(k1, (IN_DIM, HID_DIM), jnp.float32, -bound1, bound1)
    b1 = jax.random.uniform(k2, (1, HID_DIM), jnp.float32, -bound1, bound1)
    w2 = jax.random.uniform(k3, (HID_DIM, OUT_DIM), jnp.float32, -bound2, bound2)
    b2 = jax.random.uniform(k4, (1, OUT_DIM), jnp.float32, -bound2, bound2)
    return w1, b1, w2, b2


def _reference(x, w1, b1, w2, b2):
    h = jnp.maximum(x @ w1 + b1, 0.0)
    return h @ w2 + b2


if __name__ == "__main__":
    key = jax.random.PRNGKey(0)
    kx, kx2, kp = jax.random.split(key, 3)
    w1, b1, w2, b2 = _init_params(kp)

    # Small aligned batch.
    B = 8
    x = jax.random.normal(kx, (B, IN_DIM), jnp.float32)
    out = jax.block_until_ready(feature_discriminator(x, w1, b1, w2, b2))
    ref = _reference(x, w1, b1, w2, b2)
    assert out.shape == (B, OUT_DIM)
    assert jnp.allclose(out, ref, atol=1e-5, rtol=1e-5), "mismatch vs pure-JAX reference"

    # Non-multiple-of-8 batch exercises the ragged-last-block (no-pad) path.
    B2 = 10
    x2 = jax.random.normal(kx2, (B2, IN_DIM), jnp.float32)
    out2 = jax.block_until_ready(feature_discriminator(x2, w1, b1, w2, b2))
    ref2 = _reference(x2, w1, b1, w2, b2)
    assert out2.shape == (B2, OUT_DIM)
    assert jnp.allclose(out2, ref2, atol=1e-5, rtol=1e-5), "mismatch on ragged batch"

    # Optional bandwidth-saving bf16 path (looser tolerance, f32 accumulate).
    out3 = jax.block_until_ready(feature_discriminator(x2, w1, b1, w2, b2, use_bf16=True))
    assert out3.shape == (B2, OUT_DIM)
    assert jnp.allclose(out3, ref2, atol=5e-2, rtol=5e-2), "bf16 path mismatch"

    print("KERNEL_OK")
</pallas_src>

<mosaic_0001>
module attributes {stable_mosaic.version = 11 : i64} {
  func.func @_mlp_kernel(%arg0: i32, %arg1: memref<8x256xf32, #tpu.memory_space<vmem>>, %arg2: memref<256x32xf32, #tpu.memory_space<vmem>>, %arg3: memref<1x32xf32, #tpu.memory_space<vmem>>, %arg4: memref<32x2xf32, #tpu.memory_space<vmem>>, %arg5: memref<1x2xf32, #tpu.memory_space<vmem>>, %arg6: memref<8x2xf32, #tpu.memory_space<vmem>>) attributes {dimension_semantics = [#tpu.dimension_semantics<parallel>], iteration_bounds = array<i64: 1>, scalar_prefetch = 0 : i64, scratch_operands = 0 : i64, tpu.core_type = #tpu.core_type<tc>, window_params = [{transform_indices = @transform_0, window_bounds = array<i64: 8, 256>}, {pipeline_mode = #tpu.pipeline_mode<synchronous>, transform_indices = @transform_1, window_bounds = array<i64: 256, 32>}, {pipeline_mode = #tpu.pipeline_mode<synchronous>, transform_indices = @transform_2, window_bounds = array<i64: 1, 32>}, {pipeline_mode = #tpu.pipeline_mode<synchronous>, transform_indices = @transform_3, window_bounds = array<i64: 32, 2>}, {pipeline_mode = #tpu.pipeline_mode<synchronous>, transform_indices = @transform_4, window_bounds = array<i64: 1, 2>}, {transform_indices = @transform_5, window_bounds = array<i64: 8, 2>}]} {
    %c0 = arith.constant 0 : index
    %c0_0 = arith.constant 0 : index
    %0 = vector.load %arg1[%c0, %c0_0] : memref<8x256xf32, #tpu.memory_space<vmem>>, vector<8x256xf32>
    %c0_1 = arith.constant 0 : index
    %c0_2 = arith.constant 0 : index
    %1 = vector.load %arg2[%c0_1, %c0_2] : memref<256x32xf32, #tpu.memory_space<vmem>>, vector<256x32xf32>
    %cst = arith.constant dense<0.000000e+00> : vector<8x32xf32>
    %2 = tpu.matmul %0, %1, %cst {dimension_numbers = #tpu.dot_dimension_numbers<[1], [0], [0], [1], [0, 0, 1, 1], [], []>} : vector<8x256xf32>, vector<256x32xf32>, vector<8x32xf32> -> vector<8x32xf32>
    %c0_3 = arith.constant 0 : index
    %c0_4 = arith.constant 0 : index
    %3 = vector.load %arg3[%c0_3, %c0_4] : memref<1x32xf32, #tpu.memory_space<vmem>>, vector<1x32xf32>
    %4 = vector.broadcast %3 : vector<1x32xf32> to vector<8x32xf32>
    %5 = arith.addf %2, %4 : vector<8x32xf32>
    %cst_5 = arith.constant 0.000000e+00 : f32
    %6 = vector.broadcast %cst_5 : f32 to vector<8x32xf32>
    %7 = arith.maximumf %5, %6 : vector<8x32xf32>
    %c0_6 = arith.constant 0 : index
    %c0_7 = arith.constant 0 : index
    %8 = vector.load %arg4[%c0_6, %c0_7] : memref<32x2xf32, #tpu.memory_space<vmem>>, vector<32x2xf32>
    %cst_8 = arith.constant dense<0.000000e+00> : vector<8x2xf32>
    %9 = tpu.matmul %7, %8, %cst_8 {dimension_numbers = #tpu.dot_dimension_numbers<[1], [0], [0], [1], [0, 0, 1, 1], [], []>} : vector<8x32xf32>, vector<32x2xf32>, vector<8x2xf32> -> vector<8x2xf32>
    %c0_9 = arith.constant 0 : index
    %c0_10 = arith.constant 0 : index
    %10 = vector.load %arg5[%c0_9, %c0_10] : memref<1x2xf32, #tpu.memory_space<vmem>>, vector<1x2xf32>
    %11 = vector.broadcast %10 : vector<1x2xf32> to vector<8x2xf32>
    %12 = arith.addf %9, %11 : vector<8x2xf32>
    %c0_11 = arith.constant 0 : index
    %c0_12 = arith.constant 0 : index
    %13 = vector.load %arg6[%c0_11, %c0_12] : memref<8x2xf32, #tpu.memory_space<vmem>>, vector<8x2xf32>
    tpu.vector_store %arg6[%c0_11, %c0_12], %12 {strides = array<i32>} : memref<8x2xf32, #tpu.memory_space<vmem>>, vector<8x2xf32>,
    return
  }
  func.func @transform_0(%arg0: i32) -> (i32, i32) {
    %c0_i32 = arith.constant 0 : i32
    %c0_i32_0 = arith.constant 0 : i32
    return %arg0, %c0_i32 : i32, i32
  }
  func.func @transform_1(%arg0: i32) -> (i32, i32) {
    %c0_i32 = arith.constant 0 : i32
    %c0_i32_0 = arith.constant 0 : i32
    %c0_i32_1 = arith.constant 0 : i32
    return %c0_i32, %c0_i32_0 : i32, i32
  }
  func.func @transform_2(%arg0: i32) -> (i32, i32) {
    %c0_i32 = arith.constant 0 : i32
    %c0_i32_0 = arith.constant 0 : i32
    %c0_i32_1 = arith.constant 0 : i32
    return %c0_i32, %c0_i32_0 : i32, i32
  }
  func.func @transform_3(%arg0: i32) -> (i32, i32) {
    %c0_i32 = arith.constant 0 : i32
    %c0_i32_0 = arith.constant 0 : i32
    %c0_i32_1 = arith.constant 0 : i32
    return %c0_i32, %c0_i32_0 : i32, i32
  }
  func.func @transform_4(%arg0: i32) -> (i32, i32) {
    %c0_i32 = arith.constant 0 : i32
    %c0_i32_0 = arith.constant 0 : i32
    %c0_i32_1 = arith.constant 0 : i32
    return %c0_i32, %c0_i32_0 : i32, i32
  }
  func.func @transform_5(%arg0: i32) -> (i32, i32) {
    %c0_i32 = arith.constant 0 : i32
    %c0_i32_0 = arith.constant 0 : i32
    return %arg0, %c0_i32 : i32, i32
  }
}

</mosaic_0001>

<bundles_post_ra>
// kernel: tpu_custom_call.1
= control target key start
LH: loop header
LB: loop body
LE: loop exit
PB: predicated region body
PF: predicated region fallthrough
CT: control target
= control target key end

     0   :  { %vm107_vm0 = vcmask 261120   ;;  %vm131_vm1 = vcmask 15360   ;;  %s293_s1 = inlined_call_operand.vmem [shape: f32[256,32], index: 1, kind: input, shape index: {}]   ;;  %s294_s2 = inlined_call_operand.vmem [shape: f32[1,32], index: 2, kind: input, shape index: {}]   ;;  %s295_s0 = inlined_call_operand.vmem [shape: f32[8,256], index: 0, kind: input, shape index: {}]   ;;  %s296_s4 = inlined_call_operand.vmem [shape: f32[1,2], index: 4, kind: input, shape index: {}]   ;;  %s297_s3 = inlined_call_operand.vmem [shape: f32[32,2], index: 3, kind: input, shape index: {}]   ;;  %s298_s5 = inlined_call_operand.vmem [shape: f32[8,2], index: 5, kind: output, shape index: {}]  }
   0x1   :  { %v37_v0 = vld [vmem:[%s293_s1 + $0x78] sm:$0xff]  ;;  %v36_v1 = vld [vmem:[%s293_s1 + $0x70] sm:$0xff]  ;;  %v35_v4 = vld [vmem:[%s293_s1 + $0x68] sm:$0xff] }
   0x2   :  { %v53_v2 = vld [vmem:[%s293_s1 + $0xf8] sm:$0xff]  ;;  %58 = vmatpush.msra.mxu0 %v37_v0  ;;  %v52_v3 = vld [vmem:[%s293_s1 + $0xf0] sm:$0xff]  ;;  %v51_v5 = vld [vmem:[%s293_s1 + $0xe8] sm:$0xff] }
   0x3   :  { %78 = vmatpush.msra.mxu1 %v53_v2  ;;  %v34_v6 = vld [vmem:[%s293_s1 + $0x60] sm:$0xff]  ;;  %v33_v8 = vld [vmem:[%s293_s1 + $0x58] sm:$0xff]  ;;  %v32_v10 = vld [vmem:[%s293_s1 + $0x50] sm:$0xff] }
   0x4   :  { %59 = vmatpush.msra.mxu0 %v36_v1  ;;  %v50_v7 = vld [vmem:[%s293_s1 + $0xe0] sm:$0xff]  ;;  %v49_v9 = vld [vmem:[%s293_s1 + $0xd8] sm:$0xff]  ;;  %v48_v11 = vld [vmem:[%s293_s1 + $0xd0] sm:$0xff] }
   0x5   :  { %79 = vmatpush.msra.mxu1 %v52_v3  ;;  %v31_v12 = vld [vmem:[%s293_s1 + $0x48] sm:$0xff]  ;;  %v30_v14 = vld [vmem:[%s293_s1 + $0x40] sm:$0xff]  ;;  %v29_v16 = vld [vmem:[%s293_s1 + $0x38] sm:$0xff] }
   0x6   :  { %60 = vmatpush.msra.mxu0 %v35_v4  ;;  %v47_v13 = vld [vmem:[%s293_s1 + $0xc8] sm:$0xff]  ;;  %v46_v15 = vld [vmem:[%s293_s1 + $0xc0] sm:$0xff]  ;;  %v45_v17 = vld [vmem:[%s293_s1 + $0xb8] sm:$0xff] }
   0x7   :  { %80 = vmatpush.msra.mxu1 %v51_v5  ;;  %v28_v18 = vld [vmem:[%s293_s1 + $0x30] sm:$0xff]  ;;  %v27_v20 = vld [vmem:[%s293_s1 + $0x28] sm:$0xff]  ;;  %v26_v22 = vld [vmem:[%s293_s1 + $0x20] sm:$0xff] }
   0x8   :  { %61 = vmatpush.msra.mxu0 %v34_v6  ;;  %v44_v19 = vld [vmem:[%s293_s1 + $0xb0] sm:$0xff]  ;;  %v43_v21 = vld [vmem:[%s293_s1 + $0xa8] sm:$0xff]  ;;  %v42_v23 = vld [vmem:[%s293_s1 + $0xa0] sm:$0xff] }
   0x9   :  { %81 = vmatpush.msra.mxu1 %v50_v7  ;;  %v25_v24 = vld [vmem:[%s293_s1 + $0x18] sm:$0xff]  ;;  %v24_v26 = vld [vmem:[%s293_s1 + $0x10] sm:$0xff]  ;;  %v23_v28 = vld [vmem:[%s293_s1 + $0x8] sm:$0xff] }
   0xa   :  { %62 = vmatpush.msra.mxu0 %v33_v8  ;;  %v41_v25 = vld [vmem:[%s293_s1 + $0x98] sm:$0xff]  ;;  %v40_v27 = vld [vmem:[%s293_s1 + $0x90] sm:$0xff]  ;;  %v39_v29 = vld [vmem:[%s293_s1 + $0x88] sm:$0xff] }
   0xb   :  { %82 = vmatpush.msra.mxu1 %v49_v9  ;;  %v22_v30 = vld [vmem:[%s293_s1] sm:$0xff]  ;;  %v21_v33 = vld [vmem:[%s295_s0 + $0x8] sm:$0xff]  ;;  %v102_v34 = vld [vmem:[%s297_s3 + $0x18] sm:$0xff] }
   0xc   :  { %63 = vmatpush.msra.mxu0 %v32_v10  ;;  %v38_v31 = vld [vmem:[%s293_s1 + $0x80] sm:$0xff]  ;;  %123 = vmatpush.msra.mxu2 %v102_v34  ;;  %v101_v35 = vld [vmem:[%s297_s3 + $0x10] sm:$0xff]  ;;  %v100_v36 = vld [vmem:[%s297_s3 + $0x8] sm:$0xff] }
   0xd   :  { %83 = vmatpush.msra.mxu1 %v48_v11  ;;  %v20_v32 = vld [vmem:[%s295_s0] sm:$0xff] }
   0xe   :  { %64 = vmatpush.msra.mxu0 %v31_v12  ;;  %124 = vmatpush.msra.mxu2 %v101_v35  ;;  %v99_v37 = vld [vmem:[%s297_s3] sm:$0xff] }
   0xf   :  { %84 = vmatpush.msra.mxu1 %v47_v13  ;;  %v138_v38 = vld [vmem:[%s294_s2] ss:$0 sm:$0xff] }
  0x10   :  { %65 = vmatpush.msra.mxu0 %v30_v14  ;;  %125 = vmatpush.msra.mxu2 %v100_v36  ;;  %v139_v44 = vld [vmem:[%s296_s4] ss:$0 sm:$0xff] }
  0x11   :  { %85 = vmatpush.msra.mxu1 %v46_v15 }
  0x12   :  { %66 = vmatpush.msra.mxu0 %v29_v16  ;;  %126 = vmatpush.msra.mxu2 %v99_v37 }
  0x13   :  { %86 = vmatpush.msra.mxu1 %v45_v17 }
  0x14   :  { %67 = vmatpush.msra.mxu0 %v28_v18 }
  0x15   :  { %87 = vmatpush.msra.mxu1 %v44_v19 }
  0x16   :  { %68 = vmatpush.msra.mxu0 %v27_v20 }
  0x17   :  { %88 = vmatpush.msra.mxu1 %v43_v21 }
  0x18   :  { %69 = vmatpush.msra.mxu0 %v26_v22 }
  0x19   :  { %89 = vmatpush.msra.mxu1 %v42_v23 }
  0x1a   :  { %70 = vmatpush.msra.mxu0 %v25_v24 }
  0x1b   :  { %90 = vmatpush.msra.mxu1 %v41_v25 }
  0x1c   :  { %71 = vmatpush.msra.mxu0 %v24_v26 }
  0x1d   :  { %91 = vmatpush.msra.mxu1 %v40_v27 }
  0x1e   :  { %72 = vmatpush.msra.mxu0 %v23_v28 }
  0x1f   :  { %92 = vmatpush.msra.mxu1 %v39_v29 }
  0x20   :  { %73 = vmatpush.msra.mxu0 %v22_v30 }
  0x21   :  { %93 = vmatpush.msra.mxu1 %v38_v31  ;;  %74 = vmatmul.f32.vlgmr.msra.gmra.mxu0 %v20_v32 }
  0x22   :  { %94 = vmatmul.f32.vlgmr.msra.gmra.mxu1 %v21_v33 }
  0x9e   :  { %v75_v39 = vpop.f32.mrf.mxu0 }
  0x9f   :  { %v95_v40 = vpop.f32.mrf.mxu1  ;;  %v76_v41 = vadd.f32 %v138_v38, %v75_v39 }
  0xa1   :  { %v96_v42 = vadd.f32 %v95_v40, %v76_v41 }
  0xa3   :  { %v98_v43 = vmax.f32 %v96_v42, 0.0 }
  0xa5   :  { %137 = vmatmul.msk.f32.vlgmr.msra.gmra.mxu2 %vm107_vm0, %v98_v43 }
 0x128   :  { %v128_v45 = vpop.f32.mrf.mxu2 }
 0x129   :  { %v129_v46 = vadd.f32 %v139_v44, %v128_v45 }
 0x12b   :  { %132 = vst.msk [vmem:[%s298_s5] sm:$0xff] %vm131_vm1, %v129_v46 }

</bundles_post_ra>
